<compile_context>
chip_gen: v5e
topology: v5e:2x2
jax: 0.10.0
libtpu: 0.0.40
codegen_flags: <defaults>
</compile_context>

<pallas_src>
import jax
import jax.numpy as jnp
from jax.experimental import pallas as pl
from jax.experimental.pallas import tpu as pltpu

BN_EPS = 1e-5


def _round_up(x, m):
    return ((x + m - 1) // m) * m


def _head_kernel(x_ref, w_ref, b_ref, o_ref):
    # ReLU on the batch tile, then a single MXU matmul against the BN-folded weight.
    x = jnp.maximum(x_ref[...], 0.0)
    o_ref[...] = (
        jnp.dot(x, w_ref[...], preferred_element_type=jnp.float32) + b_ref[...]
    )


def fold_bn_into_linear(gamma, beta, running_mean, running_var, weight_t, bias):
    """One-time parameter transform (do this once, not per call).

    relu(x) -> BN(running stats) -> Linear  ==  relu(x) @ W_fold + b_fold
      scale  = gamma / sqrt(var + eps)
      W_fold = scale[:, None] * W        (W is (H, L), transposed vs PyTorch)
      b_fold = (beta - mean * scale) @ W + bias

    Returns lane-dense padded (H, Lp) weight and (1, Lp) bias with Lp a multiple
    of 128, plus the true num_labels L.
    """
    H, L = weight_t.shape
    scale = gamma * jax.lax.rsqrt(running_var + BN_EPS)          # (H,)
    shift = beta - running_mean * scale                          # (H,)
    w_fold = weight_t * scale[:, None]                           # (H, L)
    b_fold = shift @ weight_t + bias                             # (L,)

    Lp = _round_up(max(L, 128), 128)
    w_pad = jnp.zeros((H, Lp), dtype=jnp.float32).at[:, :L].set(w_fold)
    b_pad = jnp.zeros((1, Lp), dtype=jnp.float32).at[:, :L].set(b_fold)
    return w_pad, b_pad, L


def classification_head(x, w_pad, b_pad, num_labels, *, tm=256):
    """x: (B, H) float32. w_pad: (H, Lp), b_pad: (1, Lp) from fold_bn_into_linear.

    Returns (B, num_labels) float32.
    """
    B, H = x.shape
    Lp = w_pad.shape[1]

    # Batch tile: multiple of 8 sublanes, capped at tm (256 matches v6e/v7x MXU M-tile).
    tm_eff = min(tm, _round_up(B, 8))
    Bp = _round_up(B, tm_eff)
    if Bp != B:
        x = jnp.pad(x, ((0, Bp - B), (0, 0)))

    out = pl.pallas_call(
        _head_kernel,
        out_shape=jax.ShapeDtypeStruct((Bp, Lp), jnp.float32),
        grid_spec=pltpu.PrefetchScalarGridSpec(
            num_scalar_prefetch=0,
            grid=(Bp // tm_eff,),
            in_specs=[
                pl.BlockSpec((tm_eff, H), lambda i: (i, 0)),   # batch tile (pipelined)
                pl.BlockSpec((H, Lp), lambda i: (0, 0)),       # folded weight, VMEM-resident
                pl.BlockSpec((1, Lp), lambda i: (0, 0)),       # folded bias, VMEM-resident
            ],
            out_specs=pl.BlockSpec((tm_eff, Lp), lambda i: (i, 0)),
        ),
        compiler_params=pltpu.CompilerParams(
            dimension_semantics=("parallel",),
        ),
    )(x, w_pad, b_pad)

    return out[:B, :num_labels]


def reference(x, gamma, beta, running_mean, running_var, weight_t, bias):
    xr = jnp.maximum(x, 0.0)
    xn = (xr - running_mean) * jax.lax.rsqrt(running_var + BN_EPS) * gamma + beta
    return xn @ weight_t + bias


if __name__ == "__main__":
    # config.hidden_size = 128, config.num_labels = 8
    H, L = 128, 8

    key = jax.random.PRNGKey(0)
    kx1, kx2, kg, kb, km, kv, kw, kbi = jax.random.split(key, 8)

    # Deterministic synthetic parameters (shapes from the module's __init__).
    gamma = 1.0 + 0.1 * jax.random.normal(kg, (H,), dtype=jnp.float32)   # BN weight
    beta = 0.1 * jax.random.normal(kb, (H,), dtype=jnp.float32)          # BN bias
    running_mean = 0.05 * jax.random.normal(km, (H,), dtype=jnp.float32)
    running_var = 1.0 + 0.1 * jax.nn.softplus(
        jax.random.normal(kv, (H,), dtype=jnp.float32))
    weight_t = 0.02 * jax.random.normal(kw, (H, L), dtype=jnp.float32)   # (hidden, num_labels)
    bias = 0.01 * jax.random.normal(kbi, (L,), dtype=jnp.float32)

    # One-time parameter prep (BN fold + lane padding).
    w_pad, b_pad, num_labels = fold_bn_into_linear(
        gamma, beta, running_mean, running_var, weight_t, bias)

    # Case 1: tiny batch (single grid step).
    x_small = jax.random.normal(kx1, (8, H), dtype=jnp.float32)
    out_small = jax.block_until_ready(
        classification_head(x_small, w_pad, b_pad, num_labels))
    ref_small = reference(x_small, gamma, beta, running_mean, running_var, weight_t, bias)
    assert out_small.shape == (8, L)
    assert jnp.allclose(out_small, ref_small, atol=1e-4, rtol=1e-4), "small-batch mismatch"

    # Case 2: multi-tile batch (exercises the pipelined grid: 512 / tm=256 -> 2 steps).
    x_big = jax.random.normal(kx2, (512, H), dtype=jnp.float32)
    out_big = jax.block_until_ready(
        classification_head(x_big, w_pad, b_pad, num_labels, tm=256))
    ref_big = reference(x_big, gamma, beta, running_mean, running_var, weight_t, bias)
    assert out_big.shape == (512, L)
    assert jnp.allclose(out_big, ref_big, atol=1e-4, rtol=1e-4), "big-batch mismatch"

    print("KERNEL_OK")
</pallas_src>

<mosaic_0001>
module attributes {stable_mosaic.version = 11 : i64} {
  func.func @_head_kernel(%arg0: i32, %arg1: memref<8x128xf32, #tpu.memory_space<vmem>>, %arg2: memref<128x128xf32, #tpu.memory_space<vmem>>, %arg3: memref<1x128xf32, #tpu.memory_space<vmem>>, %arg4: memref<8x128xf32, #tpu.memory_space<vmem>>) attributes {dimension_semantics = [#tpu.dimension_semantics<parallel>], iteration_bounds = array<i64: 1>, scalar_prefetch = 0 : i64, scratch_operands = 0 : i64, tpu.core_type = #tpu.core_type<tc>, window_params = [{transform_indices = @transform_0, window_bounds = array<i64: 8, 128>}, {pipeline_mode = #tpu.pipeline_mode<synchronous>, transform_indices = @transform_1, window_bounds = array<i64: 128, 128>}, {pipeline_mode = #tpu.pipeline_mode<synchronous>, transform_indices = @transform_2, window_bounds = array<i64: 1, 128>}, {transform_indices = @transform_3, window_bounds = array<i64: 8, 128>}]} {
    %c0 = arith.constant 0 : index
    %c0_0 = arith.constant 0 : index
    %0 = vector.load %arg1[%c0, %c0_0] : memref<8x128xf32, #tpu.memory_space<vmem>>, vector<8x128xf32>
    %cst = arith.constant 0.000000e+00 : f32
    %1 = vector.broadcast %cst : f32 to vector<8x128xf32>
    %2 = arith.maximumf %0, %1 : vector<8x128xf32>
    %c0_1 = arith.constant 0 : index
    %c0_2 = arith.constant 0 : index
    %3 = vector.load %arg2[%c0_1, %c0_2] : memref<128x128xf32, #tpu.memory_space<vmem>>, vector<128x128xf32>
    %cst_3 = arith.constant dense<0.000000e+00> : vector<8x128xf32>
    %4 = tpu.matmul %2, %3, %cst_3 {dimension_numbers = #tpu.dot_dimension_numbers<[1], [0], [0], [1], [0, 0, 1, 1], [], []>} : vector<8x128xf32>, vector<128x128xf32>, vector<8x128xf32> -> vector<8x128xf32>
    %c0_4 = arith.constant 0 : index
    %c0_5 = arith.constant 0 : index
    %5 = vector.load %arg3[%c0_4, %c0_5] : memref<1x128xf32, #tpu.memory_space<vmem>>, vector<1x128xf32>
    %6 = vector.broadcast %5 : vector<1x128xf32> to vector<8x128xf32>
    %7 = arith.addf %4, %6 : vector<8x128xf32>
    %c0_6 = arith.constant 0 : index
    %c0_7 = arith.constant 0 : index
    %8 = vector.load %arg4[%c0_6, %c0_7] : memref<8x128xf32, #tpu.memory_space<vmem>>, vector<8x128xf32>
    tpu.vector_store %arg4[%c0_6, %c0_7], %7 {strides = array<i32>} : memref<8x128xf32, #tpu.memory_space<vmem>>, vector<8x128xf32>,
    return
  }
  func.func @transform_0(%arg0: i32) -> (i32, i32) {
    %c0_i32 = arith.constant 0 : i32
    %c0_i32_0 = arith.constant 0 : i32
    return %arg0, %c0_i32 : i32, i32
  }
  func.func @transform_1(%arg0: i32) -> (i32, i32) {
    %c0_i32 = arith.constant 0 : i32
    %c0_i32_0 = arith.constant 0 : i32
    %c0_i32_1 = arith.constant 0 : i32
    return %c0_i32, %c0_i32_0 : i32, i32
  }
  func.func @transform_2(%arg0: i32) -> (i32, i32) {
    %c0_i32 = arith.constant 0 : i32
    %c0_i32_0 = arith.constant 0 : i32
    %c0_i32_1 = arith.constant 0 : i32
    return %c0_i32, %c0_i32_0 : i32, i32
  }
  func.func @transform_3(%arg0: i32) -> (i32, i32) {
    %c0_i32 = arith.constant 0 : i32
    %c0_i32_0 = arith.constant 0 : i32
    return %arg0, %c0_i32 : i32, i32
  }
}

</mosaic_0001>

<bundles_post_ra>
// kernel: tpu_custom_call.1
= control target key start
LH: loop header
LB: loop body
LE: loop exit
PB: predicated region body
PF: predicated region fallthrough
CT: control target
= control target key end

     0   :  { %8 = vsyncpa [#allocation3], 0  ;;  %s227_s0 = inlined_call_operand.hbm [shape: f32[8,128], index: 0, kind: input, shape index: {}]   ;;  %s228_s1 = inlined_call_operand.hbm [shape: f32[128,128], index: 1, kind: input, shape index: {}]   ;;  %s229_s2 = inlined_call_operand.vmem [shape: f32[1,128], index: 2, kind: input, shape index: {}]   ;;  %s230_s3 = inlined_call_operand.hbm [shape: f32[8,128], index: 3, kind: output, shape index: {}]  }
   0x1   :  { %9 = vsyncpa [#allocation6], 0 }
   0x2   :  { %10 = vsyncpa [#allocation4], 0  ;;  %s16_s14 = sshll.u32 %s227_s0, 4  ;;  %s190_s15 = smov [#allocation2]   ;;  %s17_s14 = int_to_ptr.hbm [resolvable:$true] %s16_s14 }
   0x3   :  { %s18_s16 = sshll.u32 %s190_s15, 4  ;;  %s26_s19 = sshll.u32 %s228_s1, 4  ;;  %s19_s16 = int_to_ptr.vmem [resolvable:$true] %s18_s16  ;;  %s27_s19 = int_to_ptr.hbm [resolvable:$true] %s26_s19 }
   0x4   :  { %21 = dma.hbm_to_vmem [thread:$0]  %s17_s14, 128, %s19_s16, [#allocation3]  }
   0x5   :  { %s191_s20 = smov [#allocation5]   ;;  %s192_s22 = smov 128  }
   0x6   :  { %s28_s21 = sshll.u32 %s191_s20, 4  ;;  %s193_s23 = smov 8   ;;  %s29_s21 = int_to_ptr.vmem [resolvable:$true] %s28_s21 }
   0x7   :  { %34 = dma.hbm_to_vmem [thread:$0]  %s27_s19, 2048, %s29_s21, [#allocation6], %s192_s22, %s192_s22, %s193_s23  }
   0x8   :  { %184 = dma.done.wait [#allocation3], 128  }
   0x9   :  { %185 = vsyncadd [#allocation3], 4294967168 }
   0xa   :  { %186 = dma.done.wait [#allocation6], 2048  }
   0xb   :  { %187 = vsyncadd [#allocation6], 4294965248  ;;  %v62_v0 = vld [vmem:[#allocation5 + $0x78] sm:$0xff]  ;;  %v61_v1 = vld [vmem:[#allocation5 + $0x70] sm:$0xff]  ;;  %s194_s24 = smov [#allocation7]   ;;  %s95_s28 = sshll.u32 %s230_s3, 4  ;;  %s96_s28 = int_to_ptr.hbm [resolvable:$true] %s95_s28 }
   0xc   :  { %67 = vmatpush.msra.mxu0 %v62_v0  ;;  %v60_v2 = vld [vmem:[#allocation5 + $0x68] sm:$0xff]  ;;  %v59_v3 = vld [vmem:[#allocation5 + $0x60] sm:$0xff]  ;;  %v58_v4 = vld [vmem:[#allocation5 + $0x58] sm:$0xff]  ;;  %s93_s25 = sshll.u32 %s194_s24, 4  ;;  %s94_s25 = int_to_ptr.vmem [resolvable:$true] %s93_s25 }
   0xd   :  { %v57_v5 = vld [vmem:[#allocation5 + $0x50] sm:$0xff]  ;;  %v56_v6 = vld [vmem:[#allocation5 + $0x48] sm:$0xff]  ;;  %v55_v7 = vld [vmem:[#allocation5 + $0x40] sm:$0xff] }
   0xe   :  { %68 = vmatpush.msra.mxu0 %v61_v1  ;;  %v54_v8 = vld [vmem:[#allocation5 + $0x38] sm:$0xff]  ;;  %v53_v9 = vld [vmem:[#allocation5 + $0x30] sm:$0xff]  ;;  %v52_v10 = vld [vmem:[#allocation5 + $0x28] sm:$0xff] }
   0xf   :  { %v51_v11 = vld [vmem:[#allocation5 + $0x20] sm:$0xff]  ;;  %v50_v12 = vld [vmem:[#allocation5 + $0x18] sm:$0xff]  ;;  %v49_v13 = vld [vmem:[#allocation5 + $0x10] sm:$0xff] }
  0x10   :  { %69 = vmatpush.msra.mxu0 %v60_v2  ;;  %v45_v14 = vld [vmem:[#allocation2] sm:$0xff]  ;;  %v48_v15 = vld [vmem:[#allocation5 + $0x8] sm:$0xff]  ;;  %v47_v16 = vld [vmem:[#allocation5] sm:$0xff] }
  0x11   :  { %v46_v17 = vmax.f32 %v45_v14, 0.0  ;;  %v111_v18 = vld [vmem:[%s229_s2] ss:$0 sm:$0xff] }
  0x12   :  { %70 = vmatpush.msra.mxu0 %v59_v3 }
  0x14   :  { %71 = vmatpush.msra.mxu0 %v58_v4 }
  0x16   :  { %72 = vmatpush.msra.mxu0 %v57_v5 }
  0x18   :  { %73 = vmatpush.msra.mxu0 %v56_v6 }
  0x1a   :  { %74 = vmatpush.msra.mxu0 %v55_v7 }
  0x1c   :  { %75 = vmatpush.msra.mxu0 %v54_v8 }
  0x1e   :  { %76 = vmatpush.msra.mxu0 %v53_v9 }
  0x20   :  { %77 = vmatpush.msra.mxu0 %v52_v10 }
  0x22   :  { %78 = vmatpush.msra.mxu0 %v51_v11 }
  0x24   :  { %79 = vmatpush.msra.mxu0 %v50_v12 }
  0x26   :  { %80 = vmatpush.msra.mxu0 %v49_v13 }
  0x28   :  { %81 = vmatpush.msra.mxu0 %v48_v15 }
  0x2a   :  { %82 = vmatpush.msra.mxu0 %v47_v16 }
  0x2b   :  { %83 = vmatmul.f32.vlgmr.msra.gmra.mxu0 %v46_v17 }
  0xa8   :  { %v84_v19 = vpop.f32.mrf.mxu0 }
  0xa9   :  { %v85_v20 = vadd.f32 %v111_v18, %v84_v19 }
  0xab   :  { %87 = vst [vmem:[#allocation7] sm:$0xff] %v85_v20 }
  0xac   :  { %98 = dma.vmem_to_hbm [thread:$0]  %s94_s25, 128, %s96_s28, [#allocation4]  }
  0xad   :  { %188 = dma.done.wait [#allocation4], 128  }
  0xae   :  { %189 = vsyncadd [#allocation4], 4294967168 }
  0xaf   :  { %103 = vsyncpa [#allocation3], 1 }
  0xb0   :  { %104 = vsyncpa [#allocation6], 1 }
  0xb1   :  { %105 = vsyncpa [#allocation4], 1 }

</bundles_post_ra>
